<compile_context>
chip_gen: v7x
topology: tpu7x:2x2x1
jax: 0.10.0
libtpu: 0.0.40
codegen_flags: <defaults>
</compile_context>

<pallas_src>
import jax
import jax.numpy as jnp
import numpy as np
from jax.experimental import pallas as pl
from jax.experimental.pallas import tpu as pltpu

NUM_CLASSES = 20
VP = 128          # class dim padded to one full lane width
FEAT_C = 2048
BN_EPS = 1e-5     # nn.BatchNorm2d default eps
CAM_EPS = 1e-5    # make_cam epsilon


# ----------------------------------------------------------------------------
# Kernels
# ----------------------------------------------------------------------------
def _gap_cls_kernel(x_ref, wcls_ref, logits_ref):
    """with_cam=False path: classifier(GAP(x)) == mean_s(x @ Wcls^T)."""
    x = x_ref[0]                                                   # (S, C) bf16
    feat = jax.lax.dot_general(                                    # MXU, f32 acc
        x, wcls_ref[...], (((1,), (1,)), ((), ())),
        preferred_element_type=jnp.float32)                        # (S, VP)
    logits_ref[0] = jnp.mean(feat, axis=0, keepdims=True)          # (1, VP)


def _cam_head_kernel(x_ref, wall_ref, bias_ref, logits_ref, feat_ref):
    """with_cam=True path for one batch element, fully fused.

    wall = [Wcls_pad ; W_eff_pad]  -> one (S,C)x(C,2*VP) matmul gives both the
    classifier features and the fused BN+stage6 response.
    """
    x = x_ref[0]                                                   # (S, C) bf16
    s_len = x.shape[0]

    out = jax.lax.dot_general(                                     # (S, 2*VP) f32
        x, wall_ref[...], (((1,), (1,)), ((), ())),
        preferred_element_type=jnp.float32)
    feat = out[:, :VP]                                             # classifier features
    y = out[:, VP:]                                                # fused BN+stage6 (bias-free)

    feat_ref[0] = feat

    # cams = make_cam(features): relu -> per-class spatial max -> relu(x-eps)/(max+eps)
    relu_f = jnp.maximum(feat, 0.0)
    max_v = jnp.max(relu_f, axis=0, keepdims=True)                 # (1, VP)
    inv = pl.reciprocal(max_v + CAM_EPS, approx=True)              # EUP slot
    cams = jnp.maximum(relu_f - CAM_EPS, 0.0) * inv                # (S, VP)

    # logits[v] = mean_s cams[s,v]*y[s,v] + bias[v]
    logits = (jnp.sum(cams * y, axis=0, keepdims=True) * (1.0 / s_len)
              + bias_ref[...])                                     # (1, VP)
    logits_ref[0] = logits


# ----------------------------------------------------------------------------
# Wrappers
# ----------------------------------------------------------------------------
def _head_gap(x_feat, wcls_pad):
    n, s, c = x_feat.shape
    logits = pl.pallas_call(
        _gap_cls_kernel,
        out_shape=jax.ShapeDtypeStruct((n, 1, VP), jnp.float32),
        grid_spec=pltpu.PrefetchScalarGridSpec(
            num_scalar_prefetch=0,
            grid=(n,),
            in_specs=[
                pl.BlockSpec((1, s, c), lambda i: (i, 0, 0)),
                pl.BlockSpec((VP, c), lambda i: (0, 0)),
            ],
            out_specs=pl.BlockSpec((1, 1, VP), lambda i: (i, 0, 0)),
        ),
        compiler_params=pltpu.CompilerParams(dimension_semantics=("parallel",)),
    )(x_feat, wcls_pad)
    return logits.reshape(n, VP)[:, :NUM_CLASSES]


def _head_with_cam(x_feat, w_all, bias_pad):
    n, s, c = x_feat.shape
    logits, feat = pl.pallas_call(
        _cam_head_kernel,
        out_shape=(
            jax.ShapeDtypeStruct((n, 1, VP), jnp.float32),
            jax.ShapeDtypeStruct((n, s, VP), jnp.float32),
        ),
        grid_spec=pltpu.PrefetchScalarGridSpec(
            num_scalar_prefetch=0,
            grid=(n,),
            in_specs=[
                pl.BlockSpec((1, s, c), lambda i: (i, 0, 0)),
                pl.BlockSpec((2 * VP, c), lambda i: (0, 0)),
                pl.BlockSpec((1, VP), lambda i: (0, 0)),
            ],
            out_specs=[
                pl.BlockSpec((1, 1, VP), lambda i: (i, 0, 0)),
                pl.BlockSpec((1, s, VP), lambda i: (i, 0, 0)),
            ],
        ),
        compiler_params=pltpu.CompilerParams(dimension_semantics=("parallel",)),
    )(x_feat, w_all, bias_pad)
    return logits.reshape(n, VP)[:, :NUM_CLASSES], feat[:, :, :NUM_CLASSES]


def classifier_forward(x_nchw, params, with_cam=False):
    """Mirrors Classifier.forward on the stage-5 feature map (NCHW in/out)."""
    n, c, h, w = x_nchw.shape
    s = h * w
    # (N,C,H,W) -> (N, S, C); bf16 for MXU inputs / halved HBM traffic.
    x_feat = jnp.transpose(x_nchw, (0, 2, 3, 1)).reshape(n, s, c).astype(jnp.bfloat16)

    # classifier 1x1 conv weight, padded to a full 128-lane class dim.
    wcls_pad = jnp.pad(params["wcls"], ((0, VP - NUM_CLASSES), (0, 0)))

    if not with_cam:
        return _head_gap(x_feat, wcls_pad.astype(jnp.bfloat16))

    # Fold BatchNorm2d (inference stats) + stage6 1x1 conv into one weight + bias.
    scale = params["gamma"] * jax.lax.rsqrt(params["var"] + BN_EPS)        # (20, C)
    w_eff = scale * params["w6"]                                           # (20, C)
    bias = jnp.sum((params["beta"] - params["mean"] * scale) * params["w6"],
                   axis=1)                                                 # (20,)

    w_eff_pad = jnp.pad(w_eff, ((0, VP - NUM_CLASSES), (0, 0)))
    bias_pad = jnp.pad(bias, (0, VP - NUM_CLASSES)).reshape(1, VP).astype(jnp.float32)
    w_all = jnp.concatenate([wcls_pad, w_eff_pad], axis=0).astype(jnp.bfloat16)  # (2*VP, C)

    logits, feat = _head_with_cam(x_feat, w_all, bias_pad)
    features = jnp.transpose(feat.reshape(n, h, w, NUM_CLASSES), (0, 3, 1, 2))
    return logits, features


# ----------------------------------------------------------------------------
# Pure-JAX reference (NCHW, mirrors the PyTorch code literally, f32)
# ----------------------------------------------------------------------------
def reference_forward(x_nchw, params, with_cam=False):
    n, c, h, w = x_nchw.shape
    wcls = params["wcls"]
    if not with_cam:
        pooled = jnp.mean(x_nchw, axis=(2, 3))
        return pooled @ wcls.T
    feat = jnp.einsum("nchw,vc->nvhw", x_nchw, wcls)
    relu_f = jnp.maximum(feat, 0.0)
    max_v = jnp.max(relu_f.reshape(n, NUM_CLASSES, -1), axis=-1
                    ).reshape(n, NUM_CLASSES, 1, 1)
    cams = jnp.maximum(relu_f - CAM_EPS, 0.0) / (max_v + CAM_EPS)
    logits = []
    for v in range(NUM_CLASSES):
        mask = cams[:, v:v + 1]
        x_mask = x_nchw * mask
        g = params["gamma"][v].reshape(1, c, 1, 1)
        b = params["beta"][v].reshape(1, c, 1, 1)
        m = params["mean"][v].reshape(1, c, 1, 1)
        va = params["var"][v].reshape(1, c, 1, 1)
        bn = (x_mask - m) / jnp.sqrt(va + BN_EPS) * g + b
        fmap = jnp.einsum("nchw,c->nhw", bn, params["w6"][v])
        logits.append(jnp.mean(fmap, axis=(1, 2)))
    return jnp.stack(logits, axis=1), feat


# ----------------------------------------------------------------------------
# Main
# ----------------------------------------------------------------------------
if __name__ == "__main__":
    key = jax.random.PRNGKey(0)
    k_x, k_wc, k_w6, k_g, k_b, k_m, k_v = jax.random.split(key, 7)

    N, H, W = 2, 8, 8
    # stage-5 feature map (what the untranslated backbone would produce)
    x = jax.random.normal(k_x, (N, FEAT_C, H, W), dtype=jnp.float32)

    params = {
        # self.classifier: Conv2d(2048, 20, 1, bias=False) -> weight (20, 2048)
        "wcls": 0.01 * jax.random.normal(k_wc, (NUM_CLASSES, FEAT_C), jnp.float32),
        # self.stage6[v]: Conv2d(2048, 1, 1, bias=False) -> stacked (20, 2048)
        "w6": 0.01 * jax.random.normal(k_w6, (NUM_CLASSES, FEAT_C), jnp.float32),
        # self.BN[v]: BatchNorm2d(2048) -> gamma/beta/running stats, stacked (20, 2048)
        "gamma": 1.0 + 0.1 * jax.random.normal(k_g, (NUM_CLASSES, FEAT_C), jnp.float32),
        "beta": 0.1 * jax.random.normal(k_b, (NUM_CLASSES, FEAT_C), jnp.float32),
        "mean": 0.1 * jax.random.normal(k_m, (NUM_CLASSES, FEAT_C), jnp.float32),
        "var": jax.random.uniform(k_v, (NUM_CLASSES, FEAT_C), jnp.float32, 0.5, 1.5),
    }

    # with_cam=False path
    logits_plain = jax.block_until_ready(classifier_forward(x, params, with_cam=False))
    ref_plain = reference_forward(x, params, with_cam=False)
    np.testing.assert_allclose(np.asarray(logits_plain), np.asarray(ref_plain),
                               rtol=5e-2, atol=5e-2)

    # with_cam=True path
    logits_cam, features = classifier_forward(x, params, with_cam=True)
    logits_cam = jax.block_until_ready(logits_cam)
    features = jax.block_until_ready(features)
    ref_logits, ref_feat = reference_forward(x, params, with_cam=True)
    np.testing.assert_allclose(np.asarray(logits_cam), np.asarray(ref_logits),
                               rtol=5e-2, atol=5e-2)
    np.testing.assert_allclose(np.asarray(features), np.asarray(ref_feat),
                               rtol=5e-2, atol=5e-2)

    assert logits_plain.shape == (N, NUM_CLASSES)
    assert logits_cam.shape == (N, NUM_CLASSES)
    assert features.shape == (N, NUM_CLASSES, H, W)

    print("KERNEL_OK")
</pallas_src>

<mosaic_0001>
module attributes {stable_mosaic.version = 11 : i64} {
  func.func @_gap_cls_kernel(%arg0: i32, %arg1: memref<1x64x2048xbf16, #tpu.memory_space<vmem>>, %arg2: memref<128x2048xbf16, #tpu.memory_space<vmem>>, %arg3: memref<1x1x128xf32, #tpu.memory_space<vmem>>) attributes {dimension_semantics = [#tpu.dimension_semantics<parallel>], iteration_bounds = array<i64: 2>, scalar_prefetch = 0 : i64, scratch_operands = 0 : i64, tpu.core_type = #tpu.core_type<tc>, window_params = [{transform_indices = @transform_0, window_bounds = array<i64: 1, 64, 2048>}, {pipeline_mode = #tpu.pipeline_mode<synchronous>, transform_indices = @transform_1, window_bounds = array<i64: 128, 2048>}, {transform_indices = @transform_2, window_bounds = array<i64: 1, 1, 128>}]} {
    %c0 = arith.constant 0 : index
    %c0_0 = arith.constant 0 : index
    %c0_1 = arith.constant 0 : index
    %0 = vector.load %arg1[%c0, %c0_0, %c0_1] : memref<1x64x2048xbf16, #tpu.memory_space<vmem>>, vector<1x64x2048xbf16>
    %1 = vector.shape_cast %0 : vector<1x64x2048xbf16> to vector<64x2048xbf16>
    %c0_2 = arith.constant 0 : index
    %c0_3 = arith.constant 0 : index
    %2 = vector.load %arg2[%c0_2, %c0_3] : memref<128x2048xbf16, #tpu.memory_space<vmem>>, vector<128x2048xbf16>
    %cst = arith.constant dense<0.000000e+00> : vector<64x128xf32>
    %3 = tpu.matmul %1, %2, %cst {dimension_numbers = #tpu.dot_dimension_numbers<[1], [1], [0], [0], [0, 0, 1, 0], [], []>} : vector<64x2048xbf16>, vector<128x2048xbf16>, vector<64x128xf32> -> vector<64x128xf32>
    %cst_4 = arith.constant dense<0.000000e+00> : vector<128xf32>
    %4 = vector.multi_reduction <add>, %3, %cst_4 [0] : vector<64x128xf32> to vector<128xf32>
    %5 = vector.shape_cast %4 : vector<128xf32> to vector<1x128xf32>
    %cst_5 = arith.constant 6.400000e+01 : f32
    %6 = vector.broadcast %cst_5 : f32 to vector<1x128xf32>
    %7 = arith.divf %5, %6 : vector<1x128xf32>
    %c0_6 = arith.constant 0 : index
    %c0_7 = arith.constant 0 : index
    %c0_8 = arith.constant 0 : index
    %8 = vector.load %arg3[%c0_6, %c0_7, %c0_8] : memref<1x1x128xf32, #tpu.memory_space<vmem>>, vector<1x1x128xf32>
    %9 = vector.shape_cast %8 : vector<1x1x128xf32> to vector<1x128xf32>
    %10 = vector.shape_cast %7 : vector<1x128xf32> to vector<1x1x128xf32>
    tpu.vector_store %arg3[%c0_6, %c0_7, %c0_8], %10 {strides = array<i32>} : memref<1x1x128xf32, #tpu.memory_space<vmem>>, vector<1x1x128xf32>,
    return
  }
  func.func @transform_0(%arg0: i32) -> (i32, i32, i32) {
    %c0_i32 = arith.constant 0 : i32
    %c0_i32_0 = arith.constant 0 : i32
    %c0_i32_1 = arith.constant 0 : i32
    return %arg0, %c0_i32, %c0_i32_0 : i32, i32, i32
  }
  func.func @transform_1(%arg0: i32) -> (i32, i32) {
    %c0_i32 = arith.constant 0 : i32
    %c0_i32_0 = arith.constant 0 : i32
    %c0_i32_1 = arith.constant 0 : i32
    return %c0_i32, %c0_i32_0 : i32, i32
  }
  func.func @transform_2(%arg0: i32) -> (i32, i32, i32) {
    %c0_i32 = arith.constant 0 : i32
    %c0_i32_0 = arith.constant 0 : i32
    %c0_i32_1 = arith.constant 0 : i32
    return %arg0, %c0_i32, %c0_i32_0 : i32, i32, i32
  }
}

</mosaic_0001>

<bundles_post_ra>
// kernel: tpu_custom_call.1
= control target key start
LH: loop header
LB: loop body
LE: loop exit
PB: predicated region body
PF: predicated region fallthrough
CT: control target
= control target key end

     0   :  { %7 = vsyncpa [#allocation3], 0  ;;  %s2776_s0 = inlined_call_operand.hbm [shape: bf16[2,64,2048], index: 0, kind: input, shape index: {}]   ;;  %s2777_s1 = inlined_call_operand.hbm [shape: bf16[128,2048], index: 1, kind: input, shape index: {}]   ;;  %s2778_s2 = inlined_call_operand.hbm [shape: f32[2,1,128], index: 2, kind: output, shape index: {}]  }
   0x1   :  { %9 = vsyncpa [#allocation3 + $0x1], 0 }
   0x2   :  { %10 = vsyncpa [#allocation6], 0 }
   0x3   :  { %11 = vsyncpa [#allocation4], 0 }
   0x4   :  { %13 = vsyncpa [#allocation4 + $0x1], 0  ;;  %s2395_s9 = smov 0   ;;  %s2397_s10 = smov 0  }
   0x5   :  { %s2399_s11 = smov 0   ;;  %s2401_s12 = smov 0  }
   0x6 LB: > { %s2416_s13 = sadd.s32 4294967295, %s2373_s12   ;;  %s1954_s14 = sadd.s32 4294967294, %s2373_s12   ;;  %s2373_s12 = sphi %s2401_s12, %s2798_s12   ;;  %s2369_s11 = sphi %s2399_s11, %s2797_s11   ;;  %s2365_s10 = sphi %s2397_s10, %s2796_s10   ;;  %s2361_s9 = sphi %s2395_s9, %s2795_s9  }
   0x7   : > { %p39_p0 = scmp.ne.s32.totalorder %s2365_s10, %s2361_s9  ;;  %p2779_p1 = scmp.eq.s32.totalorder %s2416_s13, 0 }
   0x8   : > { %p90_p3 = scmp.eq.s32.totalorder %s1954_s14, 1  ;;  %p1955_p5 = scmp.ge.s32.totalorder %s2373_s12, 1 }
   0x9   : > { %p2425_p4 = por %p2779_p1, %p39_p0  ;;  %p97_p7 = scmp.lt.s32.totalorder %s2373_s12, 3 }
   0xa   : > { %p2430_p6 = por %p90_p3, %p39_p0  ;;  %s2375_s18 = smov [#allocation5]  }
   0xb   : > { %s2782_s15 = scalar_select %p2425_p4, 1, 0 }
   0xc   : > { %s2783_s16 = scalar_select %p2430_p6, 1, 0 }
   0xd   : > { %p2435_p8 = pnand %p1955_p5, %p97_p7  ;;  %s109_s19 = sshll.u32 %s2375_s18, 4  ;;  %s2439_s19 = int_to_ptr.vmem [resolvable:$true] %s109_s19 }
   0xe   : > { %s2451_s21 = sadd.s32 1, %s2373_s12   ;;  %s26_s22 = sadd.s32 1, %s2369_s11 }
   0xf   : > { %s2784_s17 = scalar_select %p2435_p8, 1, 0 }
  0x10   : > { %p2194_p9 = pneg %p2435_p8  ;;  %s23_s23 = ssub.s32 %s2373_s12, %s2451_s21 }
  0x11   : > { %s2245_s26 = scalar_lea.hbm %s2777_s1, 16384 }
  0x12   : > { %p2446_p11 = pnand %p2194_p9, %p2779_p1  ;;  %p2246_p12 = scmp.ne.s32.totalorder %s2777_s1, %s2245_s26 }
  0x13   : > { %p2252_p5 = scmp.lt.u32.totalorder %s2245_s26, %s2777_s1 }
  0x14   : > { %p2247_p13 = pneg %p2446_p11 }
  0x16   : > { %p2248_p0 = pnand %p2247_p13, %p2246_p12 }
  0x18   : > { %p2249_p3 = pneg %p2248_p0 }
  0x1a   : > { %p2254_p7 = pnand %p2252_p5, %p2249_p3 }
  0x1c   : > { %2257 = shalt.err (!%p2254_p7)
}
  0x1d   : > { %s2258_s3 = scalar_lea.vmem %s2439_s19, 16384  ;;  %p2266_p2 = scmp.lt.s32.totalorder %s2439_s19, %s2439_s19 }
  0x1e   : > { %p2259_p9 = scmp.ne.s32.totalorder %s2439_s19, %s2258_s3  ;;  %p2267_p6 = scmp.lt.s32.totalorder %s2258_s3, %s2258_s3 }
  0x20   : > { %p2261_p10 = pnand %p2259_p9, %p2247_p13  ;;  %p2268_p4 = por %p2267_p6, %p2266_p2 }
  0x22   : > { %p2262_p1 = pneg %p2261_p10 }
  0x24   : > { %p2269_p8 = pnand %p2268_p4, %p2262_p1 }
  0x26   : > { %2272 = shalt.err (!%p2269_p8)
}
  0x27   : > { %s2376_s4 = smov 1024   ;;  %s2377_s5 = smov 64  }
  0x28   : > { %2197 = dma.hbm_to_vmem [thread:$0]  (!%p2446_p11), %s2777_s1, 16384, %s2439_s19, [#allocation6], %s2376_s4, %s2376_s4, %s2377_s5  }
  0x29   : > { %p24_p1 = scmp.eq.s32.totalorder %s23_s23, 0  ;;  %p33_p2 = scmp.ne.s32.totalorder %s2369_s11, %s2365_s10 }
  0x2a   : > { %p34_p4 = scmp.eq.s32.totalorder %s2373_s12, 0  ;;  %p2207_p6 = scmp.lt.s32.totalorder %s2373_s12, 2 }
  0x2b   : > { %s2485_s8 = scalar_select %p24_p1, %s2369_s11, %s26_s22  }
  0x2c   : > { %p35_p8 = por %p34_p4, %p33_p2  ;;  %p2786_p10 = scmp.eq.s32.totalorder %s2416_s13, 1 }
  0x2d   : > { %s123_s18 = sand.u32 1, %s2369_s11   ;;  %s2159_s20 = sshll.u32 %s2373_s12, 13 }
  0x2e   : > { %p2489_p12 = por %p2786_p10, %p33_p2  ;;  %s1958_s24 = sshll.u32 %s123_s18, 9 }
  0x2f   : > { %s2498_s27 = scalar_lea.hbm %s2776_s0, %s2159_s20  ;;  %s127_s19 = scalar_lea.vmem [#allocation2], %s1958_s24 }
  0x30   : > { %s134_s22 = sshll.u32 %s127_s19, 4  ;;  %p2500_p11 = pnand %p2207_p6, %p35_p8  ;;  %s2504_s22 = int_to_ptr.vmem [resolvable:$true] %s134_s22 }
  0x31   : > { %s2506_s28 = scalar_lea.sflag [#allocation3], %s123_s18  ;;  %s2273_s29 = scalar_lea.hbm %s2498_s27, 8192 }
  0x32   : > { %p2274_p13 = scmp.ne.s32.totalorder %s2498_s27, %s2273_s29  ;;  %p2275_p0 = pneg %p2500_p11 }
  0x33   : > { %s2278_s6 = scalar_lea.hbm %s2776_s0, 16384  ;;  %p2279_p7 = scmp.lt.u32.totalorder %s2498_s27, %s2776_s0 }
  0x34   : > { %p2276_p3 = pnand %p2275_p0, %p2274_p13  ;;  %p2280_p9 = scmp.lt.u32.totalorder %s2278_s6, %s2273_s29 }
  0x35   : > { %p2282_p2 = scmp.lt.u32.totalorder %s2273_s29, %s2498_s27 }
  0x36   : > { %p2277_p5 = pneg %p2276_p3  ;;  %p2281_p1 = por %p2280_p9, %p2279_p7 }
  0x38   : > { %p2283_p4 = por %p2282_p2, %p2281_p1 }
  0x3a   : > { %p2284_p6 = pnand %p2283_p4, %p2277_p5 }
  0x3c   : > { %2287 = shalt.err (!%p2284_p6)
}
  0x3d   : > { %s2288_s18 = scalar_lea.vmem %s2504_s22, 8192  ;;  %s2378_s24 = smov [#allocation2]  }
  0x3e   : > { %p2289_p8 = scmp.ne.s32.totalorder %s2504_s22, %s2288_s18  ;;  %s2293_s25 = sshll.u32 %s2378_s24, 4  ;;  %s2294_s25 = int_to_ptr.vmem [resolvable:$false] %s2293_s25 }
  0x3f   : > { %s2295_s26 = scalar_lea.vmem %s2294_s25, 16384  ;;  %p2296_p3 = scmp.lt.s32.totalorder %s2504_s22, %s2294_s25 }
  0x40   : > { %p2291_p10 = pnand %p2289_p8, %p2275_p0  ;;  %p2297_p7 = scmp.lt.s32.totalorder %s2295_s26, %s2288_s18 }
  0x42   : > { %p2292_p13 = pneg %p2291_p10  ;;  %p2298_p9 = por %p2297_p7, %p2296_p3 }
  0x44   : > { %p2299_p1 = pnand %p2298_p9, %p2292_p13 }
  0x46   : > { %2302 = shalt.err (!%p2299_p1)
}
  0x47   : > { %2201 = dma.hbm_to_vmem [thread:$0]  (!%p2500_p11), %s2498_s27, 8192, %s2504_s22, %s2506_s28, %s2376_s4, %s2376_s4, %s2377_s5  }
  0x48   : > { %p2789_p0 = scmp.ne.s32.totalorder %s2784_s17, 0 }
  0x49   : > { %s2540_s19 = sand.u32 (!%p2789_p0), 1, %s2365_s10   ;;  %p2790_p5 = scmp.ne.s32.totalorder (!%p2789_p0), %s2782_s15, 0 }
  0x4a   : > { %146 = sbr.rel (%p2789_p0) target bundleno = 623 (0x26f), region = 28  ;;  %s1962_s29 = sshll.u32 (!%p2789_p0), %s2540_s19, 9 }
  0x4b   : > { %s149_s30 = scalar_lea.sflag (!%p2789_p0), [#allocation3], %s2540_s19  ;;  %s2544_s3 = scalar_lea.vmem (!%p2789_p0), [#allocation2], %s1962_s29 }
  0x51   : > { %2348 = dma.done.wait (%p2790_p5), %s149_s30, 8192  }
  0x52   : > { %2350 = vsyncadd (%p2790_p5), %s149_s30, 4294959104  ;;  %p2791_p11 = scmp.eq.s32.totalorder %s2416_s13, 0 }
  0x54   : > { %2352 = dma.done.wait (%p2791_p11), [#allocation6], 16384   ;;  %p2792_p2 = pmov %p2791_p11 }
  0x55   : > { %v241_v0 = vld [vmem:[#allocation5] sm:$0xff]  ;;  %s2156_s15 = sshll.u32 %s2416_s13, 4  ;;  %s175_s17 = scalar_lea.vmem [#allocation7], %s2540_s19 }
  0x56   : > { %2354 = vsyncadd (%p2792_p2), [#allocation6], 4294950912  ;;  %v249_v1 = vld [vmem:[#allocation5 + $0x40] sm:$0xff]  ;;  %s1878_s4 = sshll.u32 %s175_s17, 4  ;;  %s2732_s22 = scalar_lea.hbm %s2778_s2, %s2156_s15  ;;  %s2734_s4 = int_to_ptr.vmem [resolvable:$true] %s1878_s4 }
  0x57   : > { %v245_v2 = vld [vmem:[#allocation5 + $0x20] sm:$0xff]  ;;  %v2029_v3 = vcombine.high %v241_v0, %v249_v1  ;;  %v2028_v5 = vcombine.low %v241_v0, %v249_v1  ;;  %s1866_s23 = scalar_lea.sflag [#allocation4], %s2540_s19  ;;  %s2303_s28 = scalar_lea.vmem %s2734_s4, 16 }
  0x58   : > { %v253_v4 = vld [vmem:[#allocation5 + $0x60] sm:$0xff]  ;;  %p2304_p4 = scmp.ne.s32.totalorder %s2734_s4, %s2303_s28  ;;  %s2379_s13 = smov [#allocation7]  }
  0x59   : > { %v257_v6 = vld [vmem:[#allocation5 + $0x80] sm:$0xff]  ;;  %v2037_v8 = vcombine.high %v245_v2, %v253_v4  ;;  %v2036_v9 = vcombine.low %v245_v2, %v253_v4  ;;  %1329 = vmatprep.subr.bf16.mxu1 %v2029_v3  ;;  %v242_v4 = vld [vmem:[#allocation5 + $0x8] sm:$0xff]  ;;  %s2307_s6 = sshll.u32 %s2379_s13, 4  ;;  %s2308_s6 = int_to_ptr.vmem [resolvable:$false] %s2307_s6 }
  0x5a   : > { %v265_v7 = vld [vmem:[#allocation5 + $0xc0] sm:$0xff]  ;;  %1330 = vmatpush1.bf16.xpose.msra.mxu1 %v2028_v5  ;;  %v250_v5 = vld [vmem:[#allocation5 + $0x48] sm:$0xff]  ;;  %p2305_p6 = pnand %p2304_p4, %p2489_p12  ;;  %s2309_s7 = scalar_lea.vmem %s2308_s6, 32 }
  0x5b   : > { %v2045_v10 = vcombine.high %v257_v6, %v265_v7  ;;  %v261_v11 = vld [vmem:[#allocation5 + $0xa0] sm:$0xff]  ;;  %1589 = vmatprep.subr.bf16.mxu0 %v2037_v8  ;;  %v2044_v18 = vcombine.low %v257_v6, %v265_v7  ;;  %v246_v6 = vld [vmem:[#allocation5 + $0x28] sm:$0xff]  ;;  %p2310_p10 = scmp.lt.s32.totalorder %s2734_s4, %s2308_s6  ;;  %p2311_p13 = scmp.lt.s32.totalorder %s2309_s7, %s2303_s28 }
  0x5c   : > { %v269_v12 = vld [vmem:[#allocation5 + $0xe0] sm:$0xff]  ;;  %1590 = vmatpush1.bf16.xpose.msra.mxu0 %v2036_v9  ;;  %v254_v7 = vld [vmem:[#allocation5 + $0x68] sm:$0xff]  ;;  %p2306_p8 = pneg %p2305_p6 }
  0x5d   : > { %v2053_v13 = vcombine.high %v261_v11, %v269_v12  ;;  %1331 = vmatprep.subr.bf16.mxu1 %v2045_v10  ;;  %v273_v14 = vld [vmem:[#allocation5 + $0x100] sm:$0xff]  ;;  %v2052_v19 = vcombine.low %v261_v11, %v269_v12  ;;  %v2031_v10 = vcombine.high %v242_v4, %v250_v5  ;;  %v2039_v11 = vcombine.high %v246_v6, %v254_v7  ;;  %v258_v12 = vld [vmem:[#allocation5 + $0x88] sm:$0xff]  ;;  %p2312_p3 = por %p2311_p13, %p2310_p10 }
  0x5e   : > { %v281_v15 = vld [vmem:[#allocation5 + $0x140] sm:$0xff] }
  0x5f   : > { %1591 = vmatprep.subr.bf16.mxu0 %v2053_v13  ;;  %v277_v16 = vld [vmem:[#allocation5 + $0x120] sm:$0xff]  ;;  %v2061_v20 = vcombine.high %v273_v14, %v281_v15  ;;  %v2060_v32 = vcombine.low %v273_v14, %v281_v15  ;;  %v266_v13 = vld [vmem:[#allocation5 + $0xc8] sm:$0xff]  ;;  %p2313_p7 = pnand %p2312_p3, %p2306_p8 }
  0x60   : > { %v285_v17 = vld [vmem:[#allocation5 + $0x160] sm:$0xff]  ;;  %v262_v14 = vld [vmem:[#allocation5 + $0xa8] sm:$0xff] }
  0x61   : > { %v2069_v21 = vcombine.high %v277_v16, %v285_v17  ;;  %v2555_v22 = vld [vmem:[%s2544_s3] sm:$0xff]  ;;  %v2068_v33 = vcombine.low %v277_v16, %v285_v17  ;;  %v270_v16 = vld [vmem:[#allocation5 + $0xe8] sm:$0xff] }
  0x62   : > { %v2558_v23 = vld [vmem:[%s2544_s3 + $0x40] sm:$0xff]  ;;  %1332 = vmatpush1.bf16.xpose.msra.mxu1 %v2044_v18 }
  0x63   : > { %v1965_v24 = vcombine.high %v2555_v22, %v2558_v23  ;;  %v2563_v25 = vld [vmem:[%s2544_s3 + $0x20] sm:$0xff]  ;;  %1333 = vmatprep.subr.bf16.mxu1 %v2061_v20  ;;  %v1964_v15 = vcombine.low %v2555_v22, %v2558_v23  ;;  %v274_v22 = vld [vmem:[#allocation5 + $0x108] sm:$0xff] }
  0x64   : > { %v2566_v26 = vld [vmem:[%s2544_s3 + $0x60] sm:$0xff]  ;;  %1592 = vmatpush1.bf16.xpose.msra.mxu0 %v2052_v19  ;;  %v2030_v19 = vcombine.low %v242_v4, %v250_v5  ;;  %v282_v23 = vld [vmem:[#allocation5 + $0x148] sm:$0xff] }
  0x65   : > { %v1973_v27 = vcombine.high %v2563_v25, %v2566_v26  ;;  %1593 = vmatprep.subr.bf16.mxu0 %v2069_v21  ;;  %v289_v28 = vld [vmem:[#allocation5 + $0x180] sm:$0xff]  ;;  %1361 = vmatprep.mubr.bf16.mxu1 %v1965_v24  ;;  %v1972_v20 = vcombine.low %v2563_v25, %v2566_v26  ;;  %v278_v25 = vld [vmem:[#allocation5 + $0x128] sm:$0xff] }
  0x66   : > { %v297_v29 = vld [vmem:[#allocation5 + $0x1c0] sm:$0xff]  ;;  %v286_v26 = vld [vmem:[#allocation5 + $0x168] sm:$0xff] }
  0x67   : > { %v293_v30 = vld [vmem:[#allocation5 + $0x1a0] sm:$0xff]  ;;  %1621 = vmatprep.mubr.bf16.mxu0 %v1973_v27  ;;  %v2077_v34 = vcombine.high %v289_v28, %v297_v29  ;;  %v2076_v40 = vcombine.low %v289_v28, %v297_v29  ;;  %v2038_v27 = vcombine.low %v246_v6, %v254_v7  ;;  %v2047_v28 = vcombine.high %v258_v12, %v266_v13  ;;  %v2593_v5 = vld [vmem:[%s2544_s3 + $0x28] sm:$0xff] }
  0x68   : > { %v301_v31 = vld [vmem:[#allocation5 + $0x1e0] sm:$0xff]  ;;  %v2055_v29 = vcombine.high %v262_v14, %v270_v16  ;;  %v2596_v6 = vld [vmem:[%s2544_s3 + $0x68] sm:$0xff] }
  0x69   : > { %v2085_v35 = vcombine.high %v293_v30, %v301_v31  ;;  %v305_v36 = vld [vmem:[#allocation5 + $0x200] sm:$0xff]  ;;  %v2084_v41 = vcombine.low %v293_v30, %v301_v31 }
  0x6a   : > { %1334 = vmatpush1.bf16.xpose.msra.mxu1 %v2060_v32  ;;  %v313_v37 = vld [vmem:[#allocation5 + $0x240] sm:$0xff] }
  0x6b   : > { %1335 = vmatprep.subr.bf16.mxu1 %v2077_v34  ;;  %v309_v38 = vld [vmem:[#allocation5 + $0x220] sm:$0xff]  ;;  %v2093_v42 = vcombine.high %v305_v36, %v313_v37  ;;  %v2092_v48 = vcombine.low %v305_v36, %v313_v37 }
  0x6c   : > { %1594 = vmatpush1.bf16.xpose.msra.mxu0 %v2068_v33  ;;  %v317_v39 = vld [vmem:[#allocation5 + $0x260] sm:$0xff] }
  0x6d   : > { %1595 = vmatprep.subr.bf16.mxu0 %v2085_v35  ;;  %v2101_v43 = vcombine.high %v309_v38, %v317_v39  ;;  %v321_v44 = vld [vmem:[#allocation5 + $0x280] sm:$0xff]  ;;  %v2100_v49 = vcombine.low %v309_v38, %v317_v39  ;;  %v2046_v35 = vcombine.low %v258_v12, %v266_v13  ;;  %v2054_v39 = vcombine.low %v262_v14, %v270_v16  ;;  %v322_v12 = vld [vmem:[#allocation5 + $0x288] sm:$0xff] }
  0x6e   : > { %v329_v45 = vld [vmem:[#allocation5 + $0x2c0] sm:$0xff]  ;;  %v330_v13 = vld [vmem:[#allocation5 + $0x2c8] sm:$0xff] }
  0x6f   : > { %v325_v46 = vld [vmem:[#allocation5 + $0x2a0] sm:$0xff]  ;;  %v2109_v50 = vcombine.high %v321_v44, %v329_v45  ;;  %v2108_v56 = vcombine.low %v321_v44, %v329_v45  ;;  %v290_v44 = vld [vmem:[#allocation5 + $0x188] sm:$0xff] }
  0x70   : > { %v333_v47 = vld [vmem:[#allocation5 + $0x2e0] sm:$0xff]  ;;  %v298_v45 = vld [vmem:[#allocation5 + $0x1c8] sm:$0xff] }
  0x71   : > { %v2117_v51 = vcombine.high %v325_v46, %v333_v47  ;;  %v337_v52 = vld [vmem:[#allocation5 + $0x300] sm:$0xff]  ;;  %v2116_v57 = vcombine.low %v325_v46, %v333_v47  ;;  %v294_v46 = vld [vmem:[#allocation5 + $0x1a8] sm:$0xff] }
  0x72   : > { %1336 = vmatpush1.bf16.xpose.msra.mxu1 %v2076_v40  ;;  %v345_v53 = vld [vmem:[#allocation5 + $0x340] sm:$0xff]  ;;  %v2063_v40 = vcombine.high %v274_v22, %v282_v23  ;;  %v302_v47 = vld [vmem:[#allocation5 + $0x1e8] sm:$0xff] }
  0x73   : > { %1337 = vmatprep.subr.bf16.mxu1 %v2093_v42  ;;  %v341_v54 = vld [vmem:[#allocation5 + $0x320] sm:$0xff]  ;;  %v2125_v58 = vcombine.high %v337_v52, %v345_v53  ;;  %v2124_v0 = vcombine.low %v337_v52, %v345_v53  ;;  %v2086_v7 = vcombine.low %v294_v46, %v302_v47  ;;  %v326_v14 = vld [vmem:[#allocation5 + $0x2a8] sm:$0xff] }
  0x74   : > { %1596 = vmatpush1.bf16.xpose.msra.mxu0 %v2084_v41  ;;  %v349_v55 = vld [vmem:[#allocation5 + $0x360] sm:$0xff]  ;;  %v2071_v41 = vcombine.high %v278_v25, %v286_v26 }
  0x75   : > { %1597 = vmatprep.subr.bf16.mxu0 %v2101_v43  ;;  %v2133_v59 = vcombine.high %v341_v54, %v349_v55  ;;  %v353_v60 = vld [vmem:[#allocation5 + $0x380] sm:$0xff]  ;;  %v2132_v1 = vcombine.low %v341_v54, %v349_v55  ;;  %v2070_v55 = vcombine.low %v278_v25, %v286_v26  ;;  %v358_v25 = vld [vmem:[#allocation5 + $0x3a8] sm:$0xff] }
  0x76   : > { %v361_v61 = vld [vmem:[#allocation5 + $0x3c0] sm:$0xff]  ;;  %v366_v26 = vld [vmem:[#allocation5 + $0x3e8] sm:$0xff] }
  0x77   : > { %v357_v62 = vld [vmem:[#allocation5 + $0x3a0] sm:$0xff]  ;;  %v2141_v2 = vcombine.high %v353_v60, %v361_v61  ;;  %v2140_v8 = vcombine.low %v353_v60, %v361_v61  ;;  %v306_v60 = vld [vmem:[#allocation5 + $0x208] sm:$0xff] }
  0x78   : > { %v365_v63 = vld [vmem:[#allocation5 + $0x3e0] sm:$0xff]  ;;  %v314_v61 = vld [vmem:[#allocation5 + $0x248] sm:$0xff] }
  0x79   : > { %v2149_v3 = vcombine.high %v357_v62, %v365_v63  ;;  %v2148_v9 = vcombine.low %v357_v62, %v365_v63  ;;  %v193_v17 = vld [vmem:[%s2544_s3 + $0x80] sm:$0xff]  ;;  %v310_v62 = vld [vmem:[#allocation5 + $0x228] sm:$0xff]  ;;  %v2094_v16 = vcombine.low %v306_v60, %v314_v61 }
  0x7a   : > { %1338 = vmatpush1.bf16.xpose.msra.mxu1 %v2092_v48  ;;  %v201_v18 = vld [vmem:[%s2544_s3 + $0xc0] sm:$0xff]  ;;  %v318_v63 = vld [vmem:[#allocation5 + $0x268] sm:$0xff] }
  0x7b   : > { %1339 = vmatprep.subr.bf16.mxu1 %v2109_v50  ;;  %v197_v21 = vld [vmem:[%s2544_s3 + $0xa0] sm:$0xff]  ;;  %v1981_v30 = vcombine.high %v193_v17, %v201_v18  ;;  %v1980_v32 = vcombine.low %v193_v17, %v201_v18  ;;  %v2102_v17 = vcombine.low %v310_v62, %v318_v63  ;;  %v2111_v18 = vcombine.high %v322_v12, %v330_v13 }
  0x7c   : > { %1598 = vmatpush1.bf16.xpose.msra.mxu0 %v2100_v49  ;;  %v205_v24 = vld [vmem:[%s2544_s3 + $0xe0] sm:$0xff] }
  0x7d   : > { %1599 = vmatprep.subr.bf16.mxu0 %v2117_v51  ;;  %v1989_v31 = vcombine.high %v197_v21, %v205_v24  ;;  %v209_v33 = vld [vmem:[%s2544_s3 + $0x100] sm:$0xff]  ;;  %v1988_v36 = vcombine.low %v197_v21, %v205_v24  ;;  %v2062_v51 = vcombine.low %v274_v22, %v282_v23  ;;  %v346_v21 = vld [vmem:[#allocation5 + $0x348] sm:$0xff] }
  0x7e   : > { %v217_v34 = vld [vmem:[%s2544_s3 + $0x140] sm:$0xff]  ;;  %v342_v24 = vld [vmem:[#allocation5 + $0x328] sm:$0xff] }
  0x7f   : > { %v213_v37 = vld [vmem:[%s2544_s3 + $0x120] sm:$0xff]  ;;  %v1997_v42 = vcombine.high %v209_v33, %v217_v34  ;;  %v1996_v48 = vcombine.low %v209_v33, %v217_v34  ;;  %v354_v22 = vld [vmem:[#allocation5 + $0x388] sm:$0xff] }
  0x80   : > { %v221_v38 = vld [vmem:[%s2544_s3 + $0x160] sm:$0xff]  ;;  %v362_v23 = vld [vmem:[#allocation5 + $0x3c8] sm:$0xff] }
  0x81   : > { %v2005_v43 = vcombine.high %v213_v37, %v221_v38  ;;  %v225_v49 = vld [vmem:[%s2544_s3 + $0x180] sm:$0xff]  ;;  %v2004_v52 = vcombine.low %v213_v37, %v221_v38  ;;  %v2143_v34 = vcombine.high %v354_v22, %v362_v23  ;;  %v251_v37 = vld [vmem:[#allocation5 + $0x50] sm:$0xff] }
  0x82   : > { %1340 = vmatpush1.bf16.xpose.msra.mxu1 %v2108_v56  ;;  %v233_v50 = vld [vmem:[%s2544_s3 + $0x1c0] sm:$0xff]  ;;  %v2079_v56 = vcombine.high %v290_v44, %v298_v45  ;;  %v247_v38 = vld [vmem:[#allocation5 + $0x30] sm:$0xff] }
  0x83   : > { %1341 = vmatprep.subr.bf16.mxu1 %v2125_v58  ;;  %v229_v53 = vld [vmem:[%s2544_s3 + $0x1a0] sm:$0xff]  ;;  %v2013_v58 = vcombine.high %v225_v49, %v233_v50 }
  0x84   : > { %1600 = vmatpush1.bf16.xpose.msra.mxu0 %v2116_v57  ;;  %v237_v54 = vld [vmem:[%s2544_s3 + $0x1e0] sm:$0xff]  ;;  %v2087_v57 = vcombine.high %v294_v46, %v302_v47  ;;  %v259_v46 = vld [vmem:[#allocation5 + $0x90] sm:$0xff] }
  0x85   : > { %1601 = vmatprep.subr.bf16.mxu0 %v2133_v59  ;;  %v2021_v59 = vcombine.high %v229_v53, %v237_v54  ;;  %v2020_v4 = vcombine.low %v229_v53, %v237_v54  ;;  %v198_v53 = vld [vmem:[%s2544_s3 + $0xa8] sm:$0xff] }
  0x86   : > { %v206_v54 = vld [vmem:[%s2544_s3 + $0xe8] sm:$0xff] }
  0x8a   : > { %1342 = vmatpush1.bf16.xpose.msra.mxu1 %v2124_v0  ;;  %v2012_v0 = vcombine.low %v225_v49, %v233_v50  ;;  %v263_v49 = vld [vmem:[#allocation5 + $0xb0] sm:$0xff] }
  0x8b   : > { %1343 = vmatprep.subr.bf16.mxu1 %v2141_v2  ;;  %v2590_v2 = vld [vmem:[%s2544_s3 + $0x48] sm:$0xff]  ;;  %v271_v50 = vld [vmem:[#allocation5 + $0xf0] sm:$0xff] }
  0x8c   : > { %1602 = vmatpush1.bf16.xpose.msra.mxu0 %v2132_v1  ;;  %v2587_v1 = vld [vmem:[%s2544_s3 + $0x8] sm:$0xff] }
  0x8d   : > { %1603 = vmatprep.subr.bf16.mxu0 %v2149_v3  ;;  %v2078_v3 = vcombine.low %v290_v44, %v298_v45  ;;  %v194_v44 = vld [vmem:[%s2544_s3 + $0x88] sm:$0xff]  ;;  %v1966_v47 = vcombine.low %v2587_v1, %v2590_v2 }
  0x8e   : > { %v202_v45 = vld [vmem:[%s2544_s3 + $0xc8] sm:$0xff] }
  0x92   : > { %1344 = vmatpush1.bf16.xpose.msra.mxu1 %v2140_v8  ;;  %v2095_v8 = vcombine.high %v306_v60, %v314_v61  ;;  %v210_v60 = vld [vmem:[%s2544_s3 + $0x108] sm:$0xff] }
  0x93   : > { %1394 = vmatprep.subr.bf16.mxu1 %v2031_v10  ;;  %v1967_v10 = vcombine.high %v2587_v1, %v2590_v2  ;;  %v218_v61 = vld [vmem:[%s2544_s3 + $0x148] sm:$0xff]  ;;  %v279_v1 = vld [vmem:[#allocation5 + $0x130] sm:$0xff] }
  0x94   : > { %1604 = vmatpush1.bf16.xpose.msra.mxu0 %v2148_v9  ;;  %v2103_v9 = vcombine.high %v310_v62, %v318_v63  ;;  %v275_v62 = vld [vmem:[#allocation5 + $0x110] sm:$0xff] }
  0x95   : > { %1654 = vmatprep.subr.bf16.mxu0 %v2039_v11  ;;  %v1975_v11 = vcombine.high %v2593_v5, %v2596_v6  ;;  %v283_v63 = vld [vmem:[#allocation5 + $0x150] sm:$0xff] }
  0x96   : > { %v287_v2 = vld [vmem:[#allocation5 + $0x170] sm:$0xff] }
  0x99   : > { %1362 = vmatmul.mubr.bf16.vlgmr.msra.gmra.mrb[0].mxu1 %v1964_v15  ;;  %v334_v15 = vld [vmem:[#allocation5 + $0x2e8] sm:$0xff] }
  0x9a   : > { %1395 = vmatpush1.bf16.xpose.msra.mxu1 %v2030_v19  ;;  %1369 = vmatprep.mubr.bf16.mxu1 %v1981_v30  ;;  %v2119_v19 = vcombine.high %v326_v14, %v334_v15 }
  0x9b   : > { %1622 = vmatmul.mubr.bf16.vlgmr.msra.gmra.mrb[0].mxu0 %v1972_v20  ;;  %1396 = vmatprep.subr.bf16.mxu1 %v2047_v28  ;;  %v338_v20 = vld [vmem:[#allocation5 + $0x308] sm:$0xff]  ;;  %v2110_v28 = vcombine.low %v322_v12, %v330_v13 }
  0x9c   : > { %1655 = vmatpush1.bf16.xpose.msra.mxu0 %v2038_v27  ;;  %1629 = vmatprep.mubr.bf16.mxu0 %v1989_v31  ;;  %v350_v27 = vld [vmem:[#allocation5 + $0x368] sm:$0xff]  ;;  %v2127_v30 = vcombine.high %v338_v20, %v346_v21 }
  0x9d   : > { %1656 = vmatprep.subr.bf16.mxu0 %v2055_v29  ;;  %v2118_v29 = vcombine.low %v326_v14, %v334_v15  ;;  %v2135_v31 = vcombine.high %v342_v24, %v350_v27  ;;  %v2134_v33 = vcombine.low %v342_v24, %v350_v27  ;;  %v226_v12 = vld [vmem:[%s2544_s3 + $0x188] sm:$0xff]  ;;  %v291_v14 = vld [vmem:[#allocation5 + $0x190] sm:$0xff]  ;;  %v2072_v27 = vcombine.low %v279_v1, %v287_v2 }
  0x9e   : > { %v234_v13 = vld [vmem:[%s2544_s3 + $0x1c8] sm:$0xff]  ;;  %v299_v15 = vld [vmem:[#allocation5 + $0x1d0] sm:$0xff] }
  0x9f   : > { %v238_v24 = vld [vmem:[%s2544_s3 + $0x1e8] sm:$0xff] }
  0xa1   : > { %1370 = vmatmul.mubr.bf16.gmra.mrb[4].mxu1 %v1980_v32  ;;  %v2126_v32 = vcombine.low %v338_v20, %v346_v21  ;;  %v2015_v20 = vcombine.high %v226_v12, %v234_v13  ;;  %v230_v21 = vld [vmem:[%s2544_s3 + $0x1a8] sm:$0xff] }
  0xa2   : > { %1397 = vmatpush1.bf16.xpose.msra.mxu1 %v2046_v35  ;;  %1377 = vmatprep.mubr.bf16.mxu1 %v1997_v42  ;;  %v2151_v35 = vcombine.high %v358_v25, %v366_v26 }
  0xa3   : > { %1630 = vmatmul.mubr.bf16.gmra.mrb[4].mxu0 %v1988_v36  ;;  %1398 = vmatprep.subr.bf16.mxu1 %v2063_v40  ;;  %v243_v36 = vld [vmem:[#allocation5 + $0x10] sm:$0xff]  ;;  %v2142_v40 = vcombine.low %v354_v22, %v362_v23 }
  0xa4   : > { %1657 = vmatpush1.bf16.xpose.msra.mxu0 %v2054_v39  ;;  %1637 = vmatprep.mubr.bf16.mxu0 %v2005_v43  ;;  %v255_v39 = vld [vmem:[#allocation5 + $0x70] sm:$0xff]  ;;  %v2033_v42 = vcombine.high %v243_v36, %v251_v37 }
  0xa5   : > { %1658 = vmatprep.subr.bf16.mxu0 %v2071_v41  ;;  %v2150_v41 = vcombine.low %v358_v25, %v366_v26  ;;  %v2041_v43 = vcombine.high %v247_v38, %v255_v39  ;;  %v2619_v22 = vld [vmem:[%s2544_s3 + $0x10] sm:$0xff] }
  0xa6   : > { %v2622_v23 = vld [vmem:[%s2544_s3 + $0x50] sm:$0xff] }
  0xa7   : > { %v307_v25 = vld [vmem:[#allocation5 + $0x210] sm:$0xff] }
  0xa8   : > { %v315_v26 = vld [vmem:[#allocation5 + $0x250] sm:$0xff] }
  0xa9   : > { %1378 = vmatmul.mubr.bf16.gmra.mrb[8].mxu1 %v1996_v48  ;;  %v267_v48 = vld [vmem:[#allocation5 + $0xd0] sm:$0xff] }
  0xaa   : > { %1399 = vmatpush1.bf16.xpose.msra.mxu1 %v2062_v51  ;;  %1385 = vmatprep.mubr.bf16.mxu1 %v2013_v58  ;;  %v2032_v51 = vcombine.low %v243_v36, %v251_v37  ;;  %v2057_v58 = vcombine.high %v263_v49, %v271_v50  ;;  %v1969_v36 = vcombine.high %v2619_v22, %v2622_v23  ;;  %v2627_v37 = vld [vmem:[%s2544_s3 + $0x30] sm:$0xff] }
  0xab   : > { %1638 = vmatmul.mubr.bf16.gmra.mrb[8].mxu0 %v2004_v52  ;;  %1400 = vmatprep.subr.bf16.mxu1 %v2079_v56  ;;  %v1974_v52 = vcombine.low %v2593_v5, %v2596_v6  ;;  %v1983_v56 = vcombine.high %v194_v44, %v202_v45  ;;  %v214_v5 = vld [vmem:[%s2544_s3 + $0x128] sm:$0xff] }
  0xac   : > { %1659 = vmatpush1.bf16.xpose.msra.mxu0 %v2070_v55  ;;  %1645 = vmatprep.mubr.bf16.mxu0 %v2021_v59  ;;  %v2040_v55 = vcombine.low %v247_v38, %v255_v39  ;;  %v1991_v59 = vcombine.high %v198_v53, %v206_v54  ;;  %v222_v6 = vld [vmem:[%s2544_s3 + $0x168] sm:$0xff]  ;;  %v2630_v38 = vld [vmem:[%s2544_s3 + $0x70] sm:$0xff] }
  0xad   : > { %1660 = vmatprep.subr.bf16.mxu0 %v2087_v57  ;;  %v2049_v57 = vcombine.high %v259_v46, %v267_v48 }
  0xb1   : > { %1386 = vmatmul.mubr.bf16.gmra.mrb[12].mxu1 %v2012_v0  ;;  %v1982_v0 = vcombine.low %v194_v44, %v202_v45  ;;  %v323_v44 = vld [vmem:[#allocation5 + $0x290] sm:$0xff] }
  0xb2   : > { %1401 = vmatpush1.bf16.xpose.msra.mxu1 %v2078_v3  ;;  %1426 = vmatprep.mubr.bf16.mxu1 %v1967_v10  ;;  %v2048_v3 = vcombine.low %v259_v46, %v267_v48  ;;  %v1990_v10 = vcombine.low %v198_v53, %v206_v54  ;;  %v331_v45 = vld [vmem:[#allocation5 + $0x2d0] sm:$0xff]  ;;  %v2096_v48 = vcombine.low %v307_v25, %v315_v26 }
  0xb3   : > { %1646 = vmatmul.mubr.bf16.gmra.mrb[12].mxu0 %v2020_v4  ;;  %1402 = vmatprep.subr.bf16.mxu1 %v2095_v8  ;;  %v1999_v4 = vcombine.high %v210_v60, %v218_v61  ;;  %v2065_v8 = vcombine.high %v275_v62, %v283_v63  ;;  %v327_v46 = vld [vmem:[#allocation5 + $0x2b0] sm:$0xff] }
  0xb4   : > { %1661 = vmatpush1.bf16.xpose.msra.mxu0 %v2086_v7  ;;  %1686 = vmatprep.mubr.bf16.mxu0 %v1975_v11  ;;  %v2056_v7 = vcombine.low %v263_v49, %v271_v50  ;;  %v2007_v11 = vcombine.high %v214_v5, %v222_v6  ;;  %v2113_v50 = vcombine.high %v323_v44, %v331_v45  ;;  %v347_v53 = vld [vmem:[#allocation5 + $0x350] sm:$0xff] }
  0xb5   : > { %1662 = vmatprep.subr.bf16.mxu0 %v2103_v9  ;;  %v2073_v9 = vcombine.high %v279_v1, %v287_v2  ;;  %v343_v54 = vld [vmem:[#allocation5 + $0x330] sm:$0xff] }
  0xba   : > { %1403 = vmatpush1.bf16.xpose.msra.mxu1 %v2094_v16  ;;  %v1998_v16 = vcombine.low %v210_v60, %v218_v61  ;;  %v355_v60 = vld [vmem:[#allocation5 + $0x390] sm:$0xff] }
  0xbb   : > { %1404 = vmatprep.subr.bf16.mxu1 %v2111_v18  ;;  %v303_v18 = vld [vmem:[#allocation5 + $0x1f0] sm:$0xff] }
  0xbc   : > { %1663 = vmatpush1.bf16.xpose.msra.mxu0 %v2102_v17  ;;  %v295_v17 = vld [vmem:[#allocation5 + $0x1b0] sm:$0xff] }
  0xbd   : > { %1664 = vmatprep.subr.bf16.mxu0 %v2119_v19  ;;  %v2064_v19 = vcombine.low %v275_v62, %v283_v63  ;;  %v2088_v39 = vcombine.low %v295_v17, %v303_v18  ;;  %v363_v61 = vld [vmem:[#allocation5 + $0x3d0] sm:$0xff] }
  0xbe   : > { %v359_v62 = vld [vmem:[#allocation5 + $0x3b0] sm:$0xff]  ;;  %v2145_v2 = vcombine.high %v355_v60, %v363_v61 }
  0xbf   : > { %v367_v63 = vld [vmem:[#allocation5 + $0x3f0] sm:$0xff] }
  0xc2   : > { %1405 = vmatpush1.bf16.xpose.msra.mxu1 %v2110_v28  ;;  %v2081_v28 = vcombine.high %v291_v14, %v299_v15 }
  0xc3   : > { %1406 = vmatprep.subr.bf16.mxu1 %v2127_v30  ;;  %v2006_v30 = vcombine.low %v214_v5, %v222_v6  ;;  %v252_v5 = vld [vmem:[#allocation5 + $0x58] sm:$0xff] }
  0xc4   : > { %1665 = vmatpush1.bf16.xpose.msra.mxu0 %v2118_v29  ;;  %v2089_v29 = vcombine.high %v295_v17, %v303_v18  ;;  %v248_v6 = vld [vmem:[#allocation5 + $0x38] sm:$0xff] }
  0xc5   : > { %1666 = vmatprep.subr.bf16.mxu0 %v2135_v31  ;;  %v2023_v31 = vcombine.high %v230_v21, %v238_v24  ;;  %v264_v17 = vld [vmem:[#allocation5 + $0xb8] sm:$0xff] }
  0xc6   : > { %v272_v18 = vld [vmem:[#allocation5 + $0xf8] sm:$0xff] }
  0xca   : > { %1407 = vmatpush1.bf16.xpose.msra.mxu1 %v2126_v32  ;;  %v2014_v32 = vcombine.low %v226_v12, %v234_v13  ;;  %v195_v12 = vld [vmem:[%s2544_s3 + $0x90] sm:$0xff] }
  0xcb   : > { %1408 = vmatprep.subr.bf16.mxu1 %v2143_v34  ;;  %v319_v34 = vld [vmem:[#allocation5 + $0x270] sm:$0xff] }
  0xcc   : > { %1667 = vmatpush1.bf16.xpose.msra.mxu0 %v2134_v33  ;;  %v311_v33 = vld [vmem:[#allocation5 + $0x230] sm:$0xff] }
  0xcd   : > { %1668 = vmatprep.subr.bf16.mxu0 %v2151_v35  ;;  %v2080_v35 = vcombine.low %v291_v14, %v299_v15  ;;  %v2104_v49 = vcombine.low %v311_v33, %v319_v34  ;;  %v203_v13 = vld [vmem:[%s2544_s3 + $0xd0] sm:$0xff]  ;;  %v260_v14 = vld [vmem:[#allocation5 + $0x98] sm:$0xff]  ;;  %v1968_v15 = vcombine.low %v2619_v22, %v2622_v23 }
  0xce   : > { %v211_v22 = vld [vmem:[%s2544_s3 + $0x110] sm:$0xff] }
  0xcf   : > { %v219_v23 = vld [vmem:[%s2544_s3 + $0x150] sm:$0xff] }
  0xd2   : > { %1409 = vmatpush1.bf16.xpose.msra.mxu1 %v2142_v40  ;;  %v2097_v40 = vcombine.high %v307_v25, %v315_v26  ;;  %v276_v25 = vld [vmem:[#allocation5 + $0x118] sm:$0xff] }
  0xd3   : > { %1459 = vmatprep.subr.bf16.mxu1 %v2033_v42  ;;  %v2022_v42 = vcombine.low %v230_v21, %v238_v24  ;;  %v199_v21 = vld [vmem:[%s2544_s3 + $0xb0] sm:$0xff]  ;;  %v284_v26 = vld [vmem:[#allocation5 + $0x158] sm:$0xff] }
  0xd4   : > { %1669 = vmatpush1.bf16.xpose.msra.mxu0 %v2150_v41  ;;  %v2105_v41 = vcombine.high %v311_v33, %v319_v34  ;;  %v207_v24 = vld [vmem:[%s2544_s3 + $0xf0] sm:$0xff]  ;;  %v280_v33 = vld [vmem:[#allocation5 + $0x138] sm:$0xff] }
  0xd5   : > { %1719 = vmatprep.subr.bf16.mxu0 %v2041_v43  ;;  %v1977_v43 = vcombine.high %v2627_v37, %v2630_v38  ;;  %v288_v34 = vld [vmem:[#allocation5 + $0x178] sm:$0xff] }
  0xd9   : > { %1427 = vmatmul.mubr.bf16.vlgmr.msra.gmra.mrb[0].mxu1 %v1966_v47  ;;  %v335_v47 = vld [vmem:[#allocation5 + $0x2f0] sm:$0xff] }
  0xda   : > { %1460 = vmatpush1.bf16.xpose.msra.mxu1 %v2032_v51  ;;  %1434 = vmatprep.mubr.bf16.mxu1 %v1983_v56  ;;  %v2121_v51 = vcombine.high %v327_v46, %v335_v47  ;;  %v2112_v56 = vcombine.low %v323_v44, %v331_v45  ;;  %v227_v44 = vld [vmem:[%s2544_s3 + $0x190] sm:$0xff] }
  0xdb   : > { %1687 = vmatmul.mubr.bf16.vlgmr.msra.gmra.mrb[0].mxu0 %v1974_v52  ;;  %1461 = vmatprep.subr.bf16.mxu1 %v2049_v57  ;;  %v339_v52 = vld [vmem:[#allocation5 + $0x310] sm:$0xff]  ;;  %v2120_v57 = vcombine.low %v327_v46, %v335_v47  ;;  %v292_v46 = vld [vmem:[#allocation5 + $0x198] sm:$0xff] }
  0xdc   : > { %1720 = vmatpush1.bf16.xpose.msra.mxu0 %v2040_v55  ;;  %1694 = vmatprep.mubr.bf16.mxu0 %v1991_v59  ;;  %v351_v55 = vld [vmem:[#allocation5 + $0x370] sm:$0xff]  ;;  %v300_v47 = vld [vmem:[#allocation5 + $0x1d8] sm:$0xff] }
  0xdd   : > { %1721 = vmatprep.subr.bf16.mxu0 %v2057_v58  ;;  %v2129_v58 = vcombine.high %v339_v52, %v347_v53  ;;  %v2137_v59 = vcombine.high %v343_v54, %v351_v55  ;;  %v2136_v1 = vcombine.low %v343_v54, %v351_v55  ;;  %v235_v45 = vld [vmem:[%s2544_s3 + $0x1d0] sm:$0xff]  ;;  %v2074_v55 = vcombine.low %v280_v33, %v288_v34 }
  0xde   : > { %v239_v54 = vld [vmem:[%s2544_s3 + $0x1f0] sm:$0xff] }
  0xe1   : > { %1435 = vmatmul.mubr.bf16.gmra.mrb[16].mxu1 %v1982_v0  ;;  %v2128_v0 = vcombine.low %v339_v52, %v347_v53  ;;  %v2017_v52 = vcombine.high %v227_v44, %v235_v45  ;;  %v231_v53 = vld [vmem:[%s2544_s3 + $0x1b0] sm:$0xff] }
  0xe2   : > { %1462 = vmatpush1.bf16.xpose.msra.mxu1 %v2048_v3  ;;  %1442 = vmatprep.mubr.bf16.mxu1 %v1999_v4  ;;  %v2153_v3 = vcombine.high %v359_v62, %v367_v63  ;;  %v244_v4 = vld [vmem:[#allocation5 + $0x18] sm:$0xff] }
  0xe3   : > { %1463 = vmatprep.subr.bf16.mxu1 %v2065_v8  ;;  %1695 = vmatmul.mubr.bf16.gmra.mrb[16].mxu0 %v1990_v10  ;;  %v2144_v8 = vcombine.low %v355_v60, %v363_v61  ;;  %v2035_v10 = vcombine.high %v244_v4, %v252_v5  ;;  %v2651_v60 = vld [vmem:[%s2544_s3 + $0x18] sm:$0xff] }
  0xe4   : > { %1722 = vmatpush1.bf16.xpose.msra.mxu0 %v2056_v7  ;;  %1702 = vmatprep.mubr.bf16.mxu0 %v2007_v11  ;;  %v256_v7 = vld [vmem:[#allocation5 + $0x78] sm:$0xff] }
  0xe5   : > { %1723 = vmatprep.subr.bf16.mxu0 %v2073_v9  ;;  %v2152_v9 = vcombine.low %v359_v62, %v367_v63  ;;  %v2043_v11 = vcombine.high %v248_v6, %v256_v7  ;;  %v2654_v61 = vld [vmem:[%s2544_s3 + $0x58] sm:$0xff] }
  0xe6   : > { %v308_v62 = vld [vmem:[#allocation5 + $0x218] sm:$0xff] }
  0xe7   : > { %v316_v63 = vld [vmem:[#allocation5 + $0x258] sm:$0xff] }
  0xe9   : > { %1443 = vmatmul.mubr.bf16.gmra.mrb[20].mxu1 %v1998_v16  ;;  %v268_v16 = vld [vmem:[#allocation5 + $0xd8] sm:$0xff] }
  0xea   : > { %1464 = vmatpush1.bf16.xpose.msra.mxu1 %v2064_v19  ;;  %1450 = vmatprep.mubr.bf16.mxu1 %v2015_v20  ;;  %v2034_v19 = vcombine.low %v244_v4, %v252_v5  ;;  %v1976_v20 = vcombine.low %v2627_v37, %v2630_v38  ;;  %v215_v37 = vld [vmem:[%s2544_s3 + $0x130] sm:$0xff]  ;;  %v1971_v4 = vcombine.high %v2651_v60, %v2654_v61  ;;  %v2659_v5 = vld [vmem:[%s2544_s3 + $0x38] sm:$0xff] }
  0xeb   : > { %1465 = vmatprep.subr.bf16.mxu1 %v2081_v28  ;;  %1703 = vmatmul.mubr.bf16.gmra.mrb[20].mxu0 %v2006_v30  ;;  %v1985_v28 = vcombine.high %v195_v12, %v203_v13  ;;  %v2059_v30 = vcombine.high %v264_v17, %v272_v18  ;;  %v223_v38 = vld [vmem:[%s2544_s3 + $0x170] sm:$0xff] }
  0xec   : > { %1724 = vmatpush1.bf16.xpose.msra.mxu0 %v2072_v27  ;;  %1710 = vmatprep.mubr.bf16.mxu0 %v2023_v31  ;;  %v2042_v27 = vcombine.low %v248_v6, %v256_v7  ;;  %v1993_v31 = vcombine.high %v199_v21, %v207_v24  ;;  %v2662_v6 = vld [vmem:[%s2544_s3 + $0x78] sm:$0xff] }
  0xed   : > { %1725 = vmatprep.subr.bf16.mxu0 %v2089_v29  ;;  %v2051_v29 = vcombine.high %v260_v14, %v268_v16 }
  0xf1   : > { %1451 = vmatmul.mubr.bf16.gmra.mrb[24].mxu1 %v2014_v32  ;;  %v1984_v32 = vcombine.low %v195_v12, %v203_v13  ;;  %v324_v12 = vld [vmem:[#allocation5 + $0x298] sm:$0xff] }
  0xf2   : > { %1466 = vmatpush1.bf16.xpose.msra.mxu1 %v2080_v35  ;;  %1491 = vmatprep.mubr.bf16.mxu1 %v1969_v36  ;;  %v2050_v35 = vcombine.low %v260_v14, %v268_v16  ;;  %v2001_v36 = vcombine.high %v211_v22, %v219_v23  ;;  %v332_v13 = vld [vmem:[#allocation5 + $0x2d8] sm:$0xff]  ;;  %v2098_v16 = vcombine.low %v308_v62, %v316_v63 }
  0xf3   : > { %1467 = vmatprep.subr.bf16.mxu1 %v2097_v40  ;;  %1711 = vmatmul.mubr.bf16.gmra.mrb[24].mxu0 %v2022_v42  ;;  %v2067_v40 = vcombine.high %v276_v25, %v284_v26  ;;  %v1992_v42 = vcombine.low %v199_v21, %v207_v24  ;;  %v328_v14 = vld [vmem:[#allocation5 + $0x2b8] sm:$0xff] }
  0xf4   : > { %1726 = vmatpush1.bf16.xpose.msra.mxu0 %v2088_v39  ;;  %1751 = vmatprep.mubr.bf16.mxu0 %v1977_v43  ;;  %v2058_v39 = vcombine.low %v264_v17, %v272_v18  ;;  %v2009_v43 = vcombine.high %v215_v37, %v223_v38  ;;  %v2115_v18 = vcombine.high %v324_v12, %v332_v13  ;;  %v348_v21 = vld [vmem:[#allocation5 + $0x358] sm:$0xff] }
  0xf5   : > { %1727 = vmatprep.subr.bf16.mxu0 %v2105_v41  ;;  %v2075_v41 = vcombine.high %v280_v33, %v288_v34  ;;  %v344_v24 = vld [vmem:[#allocation5 + $0x338] sm:$0xff] }
  0xfa   : > { %1468 = vmatpush1.bf16.xpose.msra.mxu1 %v2096_v48  ;;  %v2000_v48 = vcombine.low %v211_v22, %v219_v23  ;;  %v356_v22 = vld [vmem:[#allocation5 + $0x398] sm:$0xff] }
  0xfb   : > { %1469 = vmatprep.subr.bf16.mxu1 %v2113_v50  ;;  %v304_v50 = vld [vmem:[#allocation5 + $0x1f8] sm:$0xff] }
  0xfc   : > { %1728 = vmatpush1.bf16.xpose.msra.mxu0 %v2104_v49  ;;  %v296_v49 = vld [vmem:[#allocation5 + $0x1b8] sm:$0xff] }
  0xfd   : > { %1729 = vmatprep.subr.bf16.mxu0 %v2121_v51  ;;  %v2066_v51 = vcombine.low %v276_v25, %v284_v26  ;;  %v2090_v7 = vcombine.low %v296_v49, %v304_v50  ;;  %v364_v23 = vld [vmem:[#allocation5 + $0x3d8] sm:$0xff] }
  0xfe   : > { %v360_v25 = vld [vmem:[#allocation5 + $0x3b8] sm:$0xff]  ;;  %v2147_v34 = vcombine.high %v356_v22, %v364_v23 }
  0xff   : > { %v368_v26 = vld [vmem:[#allocation5 + $0x3f8] sm:$0xff] }
 0x102   : > { %1470 = vmatpush1.bf16.xpose.msra.mxu1 %v2112_v56  ;;  %v2083_v56 = vcombine.high %v292_v46, %v300_v47 }
 0x103   : > { %1471 = vmatprep.subr.bf16.mxu1 %v2129_v58  ;;  %v2008_v58 = vcombine.low %v215_v37, %v223_v38  ;;  %v2154_v37 = vcombine.low %v360_v25, %v368_v26  ;;  %v196_v38 = vld [vmem:[%s2544_s3 + $0x98] sm:$0xff] }
 0x104   : > { %1730 = vmatpush1.bf16.xpose.msra.mxu0 %v2120_v57  ;;  %v2091_v57 = vcombine.high %v296_v49, %v304_v50  ;;  %v224_v49 = vld [vmem:[%s2544_s3 + $0x178] sm:$0xff] }
 0x105   : > { %1731 = vmatprep.subr.bf16.mxu0 %v2137_v59  ;;  %v2025_v59 = vcombine.high %v231_v53, %v239_v54 }
 0x10a   : > { %1472 = vmatpush1.bf16.xpose.msra.mxu1 %v2128_v0  ;;  %v2016_v0 = vcombine.low %v227_v44, %v235_v45 }
 0x10b   : > { %1473 = vmatprep.subr.bf16.mxu1 %v2145_v2  ;;  %v320_v2 = vld [vmem:[#allocation5 + $0x278] sm:$0xff] }
 0x10c   : > { %1732 = vmatpush1.bf16.xpose.msra.mxu0 %v2136_v1  ;;  %v312_v1 = vld [vmem:[#allocation5 + $0x238] sm:$0xff] }
 0x10d   : > { %1733 = vmatprep.subr.bf16.mxu0 %v2153_v3  ;;  %v2082_v3 = vcombine.low %v292_v46, %v300_v47  ;;  %v2106_v17 = vcombine.low %v312_v1, %v320_v2  ;;  %v212_v46 = vld [vmem:[%s2544_s3 + $0x118] sm:$0xff] }
 0x10e   : > { %v220_v47 = vld [vmem:[%s2544_s3 + $0x158] sm:$0xff] }
 0x112   : > { %1474 = vmatpush1.bf16.xpose.msra.mxu1 %v2144_v8  ;;  %v2099_v8 = vcombine.high %v308_v62, %v316_v63 }
 0x113   : > { %1524 = vmatprep.subr.bf16.mxu1 %v2035_v10  ;;  %v2024_v10 = vcombine.low %v231_v53, %v239_v54  ;;  %v228_v54 = vld [vmem:[%s2544_s3 + $0x198] sm:$0xff] }
 0x114   : > { %1734 = vmatpush1.bf16.xpose.msra.mxu0 %v2152_v9  ;;  %v2107_v9 = vcombine.high %v312_v1, %v320_v2 }
 0x115   : > { %1784 = vmatprep.subr.bf16.mxu0 %v2043_v11  ;;  %v1979_v11 = vcombine.high %v2659_v5, %v2662_v6 }
 0x119   : > { %1492 = vmatmul.mubr.bf16.vlgmr.msra.gmra.mrb[0].mxu1 %v1968_v15  ;;  %v336_v15 = vld [vmem:[#allocation5 + $0x2f8] sm:$0xff] }
 0x11a   : > { %1525 = vmatpush1.bf16.xpose.msra.mxu1 %v2034_v19  ;;  %1499 = vmatprep.mubr.bf16.mxu1 %v1985_v28  ;;  %v2123_v19 = vcombine.high %v328_v14, %v336_v15  ;;  %v2114_v28 = vcombine.low %v324_v12, %v332_v13 }
 0x11b   : > { %1752 = vmatmul.mubr.bf16.vlgmr.msra.gmra.mrb[0].mxu0 %v1976_v20  ;;  %1526 = vmatprep.subr.bf16.mxu1 %v2051_v29  ;;  %v340_v20 = vld [vmem:[#allocation5 + $0x318] sm:$0xff]  ;;  %v2122_v29 = vcombine.low %v328_v14, %v336_v15 }
 0x11c   : > { %1785 = vmatpush1.bf16.xpose.msra.mxu0 %v2042_v27  ;;  %1759 = vmatprep.mubr.bf16.mxu0 %v1993_v31  ;;  %v352_v27 = vld [vmem:[#allocation5 + $0x378] sm:$0xff] }
 0x11d   : > { %1786 = vmatprep.subr.bf16.mxu0 %v2059_v30  ;;  %v2131_v30 = vcombine.high %v340_v20, %v348_v21  ;;  %v2139_v31 = vcombine.high %v344_v24, %v352_v27  ;;  %v2138_v33 = vcombine.low %v344_v24, %v352_v27 }
 0x121   : > { %1500 = vmatmul.mubr.bf16.gmra.mrb[28].mxu1 %v1984_v32  ;;  %v2130_v32 = vcombine.low %v340_v20, %v348_v21 }
 0x122   : > { %1527 = vmatpush1.bf16.xpose.msra.mxu1 %v2050_v35  ;;  %1507 = vmatprep.mubr.bf16.mxu1 %v2001_v36  ;;  %v2155_v35 = vcombine.high %v360_v25, %v368_v26  ;;  %v2146_v36 = vcombine.low %v356_v22, %v364_v23 }
 0x123   : > { %1528 = vmatprep.subr.bf16.mxu1 %v2067_v40  ;;  %1760 = vmatmul.mubr.bf16.gmra.mrb[28].mxu0 %v1992_v42  ;;  %v200_v40 = vld [vmem:[%s2544_s3 + $0xb8] sm:$0xff]  ;;  %v1970_v42 = vcombine.low %v2651_v60, %v2654_v61 }
 0x124   : > { %1787 = vmatpush1.bf16.xpose.msra.mxu0 %v2058_v39  ;;  %1767 = vmatprep.mubr.bf16.mxu0 %v2009_v43  ;;  %v204_v39 = vld [vmem:[%s2544_s3 + $0xd8] sm:$0xff]  ;;  %v1978_v43 = vcombine.low %v2659_v5, %v2662_v6 }
 0x125   : > { %1788 = vmatprep.subr.bf16.mxu0 %v2075_v41  ;;  %v208_v41 = vld [vmem:[%s2544_s3 + $0xf8] sm:$0xff]  ;;  %v1987_v44 = vcombine.high %v196_v38, %v204_v39  ;;  %v1986_v50 = vcombine.low %v196_v38, %v204_v39 }
 0x126   : > { %v1995_v45 = vcombine.high %v200_v40, %v208_v41 }
 0x129   : > { %1508 = vmatmul.mubr.bf16.gmra.mrb[32].mxu1 %v2000_v48  ;;  %v216_v48 = vld [vmem:[%s2544_s3 + $0x138] sm:$0xff] }
 0x12a   : > { %1529 = vmatpush1.bf16.xpose.msra.mxu1 %v2066_v51  ;;  %1515 = vmatprep.mubr.bf16.mxu1 %v2017_v52  ;;  %v1994_v51 = vcombine.low %v200_v40, %v208_v41  ;;  %v2003_v52 = vcombine.high %v212_v46, %v220_v47  ;;  %v2011_v53 = vcombine.high %v216_v48, %v224_v49 }
 0x12b   : > { %1530 = vmatprep.subr.bf16.mxu1 %v2083_v56  ;;  %1768 = vmatmul.mubr.bf16.gmra.mrb[32].mxu0 %v2008_v58  ;;  %v232_v56 = vld [vmem:[%s2544_s3 + $0x1b8] sm:$0xff]  ;;  %v2002_v58 = vcombine.low %v212_v46, %v220_v47 }
 0x12c   : > { %1789 = vmatpush1.bf16.xpose.msra.mxu0 %v2074_v55  ;;  %1775 = vmatprep.mubr.bf16.mxu0 %v2025_v59  ;;  %v236_v55 = vld [vmem:[%s2544_s3 + $0x1d8] sm:$0xff]  ;;  %v2010_v59 = vcombine.low %v216_v48, %v224_v49 }
 0x12d   : > { %1790 = vmatprep.subr.bf16.mxu0 %v2091_v57  ;;  %v240_v57 = vld [vmem:[%s2544_s3 + $0x1f8] sm:$0xff]  ;;  %v2019_v60 = vcombine.high %v228_v54, %v236_v55  ;;  %v2018_v62 = vcombine.low %v228_v54, %v236_v55 }
 0x12e   : > { %v2027_v61 = vcombine.high %v232_v56, %v240_v57  ;;  %v2026_v63 = vcombine.low %v232_v56, %v240_v57 }
 0x131   : > { %1516 = vmatmul.mubr.bf16.gmra.mrb[36].mxu1 %v2016_v0 }
 0x132   : > { %1531 = vmatpush1.bf16.xpose.msra.mxu1 %v2082_v3  ;;  %1556 = vmatprep.mubr.bf16.mxu1 %v1971_v4 }
 0x133   : > { %1532 = vmatprep.subr.bf16.mxu1 %v2099_v8  ;;  %1776 = vmatmul.mubr.bf16.gmra.mrb[36].mxu0 %v2024_v10 }
 0x134   : > { %1791 = vmatpush1.bf16.xpose.msra.mxu0 %v2090_v7  ;;  %1816 = vmatprep.mubr.bf16.mxu0 %v1979_v11 }
 0x135   : > { %1792 = vmatprep.subr.bf16.mxu0 %v2107_v9 }
 0x13a   : > { %1533 = vmatpush1.bf16.xpose.msra.mxu1 %v2098_v16 }
 0x13b   : > { %1534 = vmatprep.subr.bf16.mxu1 %v2115_v18 }
 0x13c   : > { %1793 = vmatpush1.bf16.xpose.msra.mxu0 %v2106_v17 }
 0x13d   : > { %1794 = vmatprep.subr.bf16.mxu0 %v2123_v19 }
 0x142   : > { %1535 = vmatpush1.bf16.xpose.msra.mxu1 %v2114_v28 }
 0x143   : > { %1536 = vmatprep.subr.bf16.mxu1 %v2131_v30 }
 0x144   : > { %1795 = vmatpush1.bf16.xpose.msra.mxu0 %v2122_v29 }
 0x145   : > { %1796 = vmatprep.subr.bf16.mxu0 %v2139_v31 }
 0x14a   : > { %1537 = vmatpush1.bf16.xpose.msra.mxu1 %v2130_v32 }
 0x14b   : > { %1538 = vmatprep.subr.bf16.mxu1 %v2147_v34 }
 0x14c   : > { %1797 = vmatpush1.bf16.xpose.msra.mxu0 %v2138_v33 }
 0x14d   : > { %1798 = vmatprep.subr.bf16.mxu0 %v2155_v35 }
 0x152   : > { %1539 = vmatpush1.bf16.xpose.msra.mxu1 %v2146_v36 }
 0x154   : > { %1799 = vmatpush1.bf16.xpose.msra.mxu0 %v2154_v37 }
 0x159   : > { %1557 = vmatmul.mubr.bf16.vlgmr.msra.gmra.mrb[0].mxu1 %v1970_v42 }
 0x15a   : > { %1564 = vmatprep.mubr.bf16.mxu1 %v1987_v44 }
 0x15b   : > { %1817 = vmatmul.mubr.bf16.vlgmr.msra.gmra.mrb[0].mxu0 %v1978_v43 }
 0x15c   : > { %1824 = vmatprep.mubr.bf16.mxu0 %v1995_v45 }
 0x161   : > { %1565 = vmatmul.mubr.bf16.gmra.mrb[40].mxu1 %v1986_v50 }
 0x162   : > { %1572 = vmatprep.mubr.bf16.mxu1 %v2003_v52 }
 0x163   : > { %1825 = vmatmul.mubr.bf16.gmra.mrb[40].mxu0 %v1994_v51 }
 0x164   : > { %1832 = vmatprep.mubr.bf16.mxu0 %v2011_v53 }
 0x169   : > { %1573 = vmatmul.mubr.bf16.gmra.mrb[44].mxu1 %v2002_v58 }
 0x16a   : > { %1580 = vmatprep.mubr.bf16.mxu1 %v2019_v60 }
 0x16b   : > { %1833 = vmatmul.mubr.bf16.gmra.mrb[44].mxu0 %v2010_v59 }
 0x16c   : > { %1840 = vmatprep.mubr.bf16.mxu0 %v2027_v61 }
 0x171   : > { %1581 = vmatmul.mubr.bf16.gmra.mrb[48].mxu1 %v2018_v62 }
 0x173   : > { %1841 = vmatmul.mubr.bf16.gmra.mrb[48].mxu0 %v2026_v63 }
 0x174   : > { %v1371_v0 = vpop.f32.mrb[4].mxu1 }
 0x175   : > { %v1373_v1 = vpop.f32.mrb[5].mxu1 }
 0x176   : > { %v2682_v2 = vpop.f32.mrb[4].mxu0  ;;  %v1374_v3 = vpop.f32.mrb[6].mxu1 }
 0x177   : > { %v1633_v4 = vpop.f32.mrb[5].mxu0  ;;  %v1376_v5 = vpop.f32.mrb[7].mxu1 }
 0x178   : > { %v2684_v6 = vpop.f32.mrb[6].mxu0 }
 0x179   : > { %v1636_v7 = vpop.f32.mrb[7].mxu0 }
 0x17c   : > { %v1379_v8 = vpop.f32.mrb[8].mxu1 }
 0x17d   : > { %v1381_v9 = vpop.f32.mrb[9].mxu1 }
 0x17e   : > { %v2686_v10 = vpop.f32.mrb[8].mxu0  ;;  %v1382_v11 = vpop.f32.mrb[10].mxu1 }
 0x17f   : > { %v1641_v12 = vpop.f32.mrb[9].mxu0  ;;  %v1384_v13 = vpop.f32.mrb[11].mxu1 }
 0x180   : > { %v2688_v14 = vpop.f32.mrb[10].mxu0 }
 0x181   : > { %v1644_v15 = vpop.f32.mrb[11].mxu0 }
 0x184   : > { %v1387_v16 = vpop.f32.mrb[12].mxu1 }
 0x185   : > { %v1389_v17 = vpop.f32.mrb[13].mxu1 }
 0x186   : > { %v2690_v18 = vpop.f32.mrb[12].mxu0  ;;  %v1390_v19 = vpop.f32.mrb[14].mxu1 }
 0x187   : > { %v1649_v20 = vpop.f32.mrb[13].mxu0  ;;  %v1392_v21 = vpop.f32.mrb[15].mxu1 }
 0x188   : > { %v2692_v24 = vpop.f32.mrb[14].mxu0 }
 0x189   : > { %v1652_v27 = vpop.f32.mrb[15].mxu0 }
 0x1b4   : > { %v1436_v28 = vpop.f32.mrb[16].mxu1 }
 0x1b5   : > { %v1437_v29 = vadd.f32 %v1436_v28, %v1371_v0  ;;  %v1438_v30 = vpop.f32.mrb[17].mxu1 }
 0x1b6   : > { %v1439_v31 = vpop.f32.mrb[18].mxu1  ;;  %v2694_v25 = vpop.f32.mrb[16].mxu0 }
 0x1b7   : > { %v1440_v22 = vadd.f32 %v1439_v31, %v1374_v3  ;;  %v1441_v23 = vpop.f32.mrb[19].mxu1  ;;  %v1698_v26 = vpop.f32.mrb[17].mxu0 }
 0x1b8   : > { %v2696_v32 = vpop.f32.mrb[18].mxu0 }
 0x1b9   : > { %v1701_v33 = vpop.f32.mrb[19].mxu0 }
 0x1bc   : > { %v1444_v34 = vpop.f32.mrb[20].mxu1 }
 0x1bd   : > { %v1445_v35 = vadd.f32 %v1444_v34, %v1379_v8  ;;  %v1446_v36 = vpop.f32.mrb[21].mxu1 }
 0x1be   : > { %v1447_v37 = vpop.f32.mrb[22].mxu1  ;;  %v2698_v40 = vpop.f32.mrb[20].mxu0 }
 0x1bf   : > { %v1448_v38 = vadd.f32 %v1447_v37, %v1382_v11  ;;  %v1449_v39 = vpop.f32.mrb[23].mxu1  ;;  %v1706_v41 = vpop.f32.mrb[21].mxu0 }
 0x1c0   : > { %v2700_v42 = vpop.f32.mrb[22].mxu0 }
 0x1c1   : > { %v1709_v43 = vpop.f32.mrb[23].mxu0 }
 0x1c4   : > { %v1452_v44 = vpop.f32.mrb[24].mxu1 }
 0x1c5   : > { %v1453_v45 = vadd.f32 %v1452_v44, %v1387_v16  ;;  %v1454_v46 = vpop.f32.mrb[25].mxu1 }
 0x1c6   : > { %v1455_v47 = vpop.f32.mrb[26].mxu1  ;;  %v2702_v50 = vpop.f32.mrb[24].mxu0 }
 0x1c7   : > { %v1456_v48 = vadd.f32 %v1455_v47, %v1390_v19  ;;  %v1457_v49 = vpop.f32.mrb[27].mxu1  ;;  %v1714_v51 = vpop.f32.mrb[25].mxu0 }
 0x1c8   : > { %v2704_v52 = vpop.f32.mrb[26].mxu0 }
 0x1c9   : > { %v1717_v53 = vpop.f32.mrb[27].mxu0 }
 0x1f4   : > { %v1501_v54 = vpop.f32.mrb[28].mxu1 }
 0x1f5   : > { %v1502_v55 = vadd.f32 %v1501_v54, %v1437_v29  ;;  %v1503_v56 = vpop.f32.mrb[29].mxu1 }
 0x1f6   : > { %v1504_v57 = vpop.f32.mrb[30].mxu1  ;;  %v1761_v60 = vpop.f32.mrb[28].mxu0 }
 0x1f7   : > { %v1505_v58 = vadd.f32 %v1504_v57, %v1440_v22  ;;  %v1506_v59 = vpop.f32.mrb[31].mxu1  ;;  %v1763_v61 = vpop.f32.mrb[29].mxu0 }
 0x1f8   : > { %v1764_v62 = vpop.f32.mrb[30].mxu0 }
 0x1f9   : > { %v1766_v63 = vpop.f32.mrb[31].mxu0 }
 0x1fc   : > { %v1509_v0 = vpop.f32.mrb[32].mxu1 }
 0x1fd   : > { %v1510_v1 = vadd.f32 %v1509_v0, %v1445_v35  ;;  %v1511_v3 = vpop.f32.mrb[33].mxu1 }
 0x1fe   : > { %v1512_v4 = vpop.f32.mrb[34].mxu1  ;;  %v1769_v8 = vpop.f32.mrb[32].mxu0 }
 0x1ff   : > { %v1513_v5 = vadd.f32 %v1512_v4, %v1448_v38  ;;  %v1514_v7 = vpop.f32.mrb[35].mxu1  ;;  %v1771_v9 = vpop.f32.mrb[33].mxu0 }
 0x200   : > { %v1772_v11 = vpop.f32.mrb[34].mxu0 }
 0x201   : > { %v1774_v12 = vpop.f32.mrb[35].mxu0 }
 0x204   : > { %v1517_v13 = vpop.f32.mrb[36].mxu1 }
 0x205   : > { %v1518_v15 = vadd.f32 %v1517_v13, %v1453_v45  ;;  %v1519_v16 = vpop.f32.mrb[37].mxu1 }
 0x206   : > { %v1520_v17 = vpop.f32.mrb[38].mxu1  ;;  %v2708_v21 = vpop.f32.mrb[36].mxu0 }
 0x207   : > { %v2706_v19 = vadd.f32 %v1520_v17, %v1456_v48  ;;  %v1522_v20 = vpop.f32.mrb[39].mxu1  ;;  %v1779_v27 = vpop.f32.mrb[37].mxu0 }
 0x208   : > { %v2710_v28 = vpop.f32.mrb[38].mxu0 }
 0x209   : > { %v1782_v29 = vpop.f32.mrb[39].mxu0 }
 0x22c   : > { %v1558_v30 = vpop.f32.mrb[0].mxu1 }
 0x22d   : > { %v1560_v22 = vpop.f32.mrb[1].mxu1 }
 0x22e   : > { %v1818_v31 = vpop.f32.mrb[0].mxu0  ;;  %v1561_v33 = vpop.f32.mrb[2].mxu1 }
 0x22f   : > { %v2160_v23 = vadd.f32 %v1818_v31, %v1558_v30  ;;  %v1820_v26 = vpop.f32.mrb[1].mxu0  ;;  %v1563_v35 = vpop.f32.mrb[3].mxu1 }
 0x230   : > { %v1821_v34 = vpop.f32.mrb[2].mxu0 }
 0x231   : > { %v2161_v36 = vadd.f32 %v1821_v34, %v1561_v33  ;;  %v1823_v37 = vpop.f32.mrb[3].mxu0 }
 0x233   : > { %v1849_v38 = vadd.f32 %v2161_v36, %v2160_v23 }
 0x234   : > { %v1566_v39 = vpop.f32.mrb[40].mxu1 }
 0x235   : > { %v1567_v41 = vadd.f32 %v1566_v39, %v1502_v55  ;;  %v1568_v43 = vpop.f32.mrb[41].mxu1 }
 0x236   : > { %v1826_v44 = vpop.f32.mrb[40].mxu0  ;;  %v1569_v45 = vpop.f32.mrb[42].mxu1 }
 0x237   : > { %v1828_v46 = vpop.f32.mrb[41].mxu0  ;;  %v1632_v47 = vadd.f32 %v2682_v2, %v1567_v41  ;;  %v1570_v48 = vadd.f32 %v1569_v45, %v1505_v58  ;;  %v1571_v49 = vpop.f32.mrb[43].mxu1 }
 0x238   : > { %v1829_v51 = vpop.f32.mrb[42].mxu0 }
 0x239   : > { %v1831_v53 = vpop.f32.mrb[43].mxu0  ;;  %v1635_v54 = vadd.f32 %v2684_v6, %v1570_v48  ;;  %v1697_v56 = vadd.f32 %v2694_v25, %v1632_v47 }
 0x23b   : > { %v1762_v57 = vadd.f32 %v1761_v60, %v1697_v56  ;;  %v1700_v59 = vadd.f32 %v2696_v32, %v1635_v54 }
 0x23c   : > { %v1574_v61 = vpop.f32.mrb[44].mxu1 }
 0x23d   : > { %v1827_v63 = vadd.f32 %v1826_v44, %v1762_v57  ;;  %v1765_v55 = vadd.f32 %v1764_v62, %v1700_v59  ;;  %v1575_v0 = vadd.f32 %v1574_v61, %v1510_v1  ;;  %v1576_v3 = vpop.f32.mrb[45].mxu1 }
 0x23e   : > { %v1834_v4 = vpop.f32.mrb[44].mxu0  ;;  %v1577_v7 = vpop.f32.mrb[46].mxu1 }
 0x23f   : > { %v1836_v9 = vpop.f32.mrb[45].mxu0  ;;  %v1850_v2 = vadd.f32 %v1849_v38, %v1827_v63  ;;  %v1830_v58 = vadd.f32 %v1829_v51, %v1765_v55  ;;  %v1640_v12 = vadd.f32 %v2686_v10, %v1575_v0  ;;  %v1578_v13 = vadd.f32 %v1577_v7, %v1513_v5  ;;  %v1579_v16 = vpop.f32.mrb[47].mxu1 }
 0x240   : > { %v1837_v6 = vpop.f32.mrb[46].mxu0 }
 0x241   : > { %v1839_v17 = vpop.f32.mrb[47].mxu0  ;;  %v1851_v25 = vadd.f32 %v1850_v2, %v1830_v58  ;;  %v1643_v60 = vadd.f32 %v2688_v14, %v1578_v13  ;;  %v1705_v32 = vadd.f32 %v2698_v40, %v1640_v12 }
 0x243   : > { %v1770_v20 = vadd.f32 %v1769_v8, %v1705_v32  ;;  %v1708_v62 = vadd.f32 %v2700_v42, %v1643_v60 }
 0x244   : > { %v1582_v1 = vpop.f32.mrb[48].mxu1 }
 0x245   : > { %v1835_v27 = vadd.f32 %v1834_v4, %v1770_v20  ;;  %v1773_v29 = vadd.f32 %v1772_v11, %v1708_v62  ;;  %v1583_v30 = vadd.f32 %v1582_v1, %v1518_v15  ;;  %v1584_v31 = vpop.f32.mrb[49].mxu1 }
 0x246   : > { %v1842_v22 = vpop.f32.mrb[48].mxu0  ;;  %v1585_v23 = vpop.f32.mrb[50].mxu1 }
 0x247   : > { %v1844_v10 = vpop.f32.mrb[49].mxu0  ;;  %v1852_v5 = vadd.f32 %v1851_v25, %v1835_v27  ;;  %v1838_v26 = vadd.f32 %v1837_v6, %v1773_v29  ;;  %v1648_v33 = vadd.f32 %v2690_v18, %v1583_v30  ;;  %v1586_v34 = vadd.f32 %v1585_v23, %v2706_v19  ;;  %v1587_v14 = vpop.f32.mrb[51].mxu1 }
 0x248   : > { %v1845_v35 = vpop.f32.mrb[50].mxu0 }
 0x249   : > { %v1847_v40 = vpop.f32.mrb[51].mxu0  ;;  %v1853_v8 = vadd.f32 %v1852_v5, %v1838_v26  ;;  %v1651_v42 = vadd.f32 %v2692_v24, %v1586_v34  ;;  %v1713_v11 = vadd.f32 %v2702_v50, %v1648_v33 }
 0x24b   : > { %v1778_v15 = vadd.f32 %v2708_v21, %v1713_v11  ;;  %v1716_v36 = vadd.f32 %v2704_v52, %v1651_v42 }
 0x24d   : > { %v1843_v37 = vadd.f32 %v1842_v22, %v1778_v15  ;;  %v1781_v38 = vadd.f32 %v2710_v28, %v1716_v36 }
 0x24f   : > { %v1854_v18 = vadd.f32 %v1853_v8, %v1843_v37  ;;  %v1846_v19 = vadd.f32 %v1845_v35, %v1781_v38 }
 0x251   : > { %v1855_v39 = vadd.f32 %v1854_v18, %v1846_v19 }
 0x253   : > { %v1856_v41 = vrot.slane %v1855_v39, 4 }
 0x255   : > { %v1857_v43 = vadd.f32 %v1856_v41, %v1855_v39 }
 0x257   : > { %v1858_v44 = vrot.slane %v1857_v43, 2 }
 0x259   : > { %v1859_v45 = vadd.f32 %v1858_v44, %v1857_v43 }
 0x25b   : > { %v1860_v46 = vrot.slane %v1859_v45, 1 }
 0x25d   : > { %v1861_v24 = vadd.f32 %v1860_v46, %v1859_v45 }
 0x25f   : > { %v1863_v50 = vmul.f32 0.015625, %v1861_v24 }
 0x261   : > { %1864 = vst [vmem:[%s175_s17] sm:$0x1] %v1863_v50 }
 0x262   : > { %2316 = shalt.err (!%p2313_p7)
}
 0x263   : > { %s2317_s20 = scalar_lea.hbm %s2732_s22, 16  ;;  %s2321_s25 = scalar_lea.hbm %s2778_s2, 32 }
 0x264   : > { %p2318_p9 = scmp.ne.s32.totalorder %s2732_s22, %s2317_s20  ;;  %p2322_p5 = scmp.lt.u32.totalorder %s2732_s22, %s2778_s2 }
 0x265   : > { %p2323_p11 = scmp.lt.u32.totalorder %s2321_s25, %s2317_s20  ;;  %p2325_p4 = scmp.lt.u32.totalorder %s2317_s20, %s2732_s22 }
 0x266   : > { %p2319_p1 = pnand %p2318_p9, %p2489_p12 }
 0x267   : > { %p2324_p2 = por %p2323_p11, %p2322_p5 }
 0x268   : > { %p2320_p0 = pneg %p2319_p1 }
 0x269   : > { %p2326_p6 = por %p2325_p4, %p2324_p2 }
 0x26b   : > { %p2327_p8 = pnand %p2326_p6, %p2320_p0 }
 0x26d   : > { %2330 = shalt.err (!%p2327_p8)
}
 0x26e   : > { %2192 = dma.vmem_to_hbm [thread:$0]  (%p2489_p12), %s2734_s4, 16, %s2732_s22, %s1866_s23  }
 0x26f PF: > { %s1890_s29 = sand.u32 1, %s2361_s9   ;;  %p2793_p10 = scmp.ne.s32.totalorder %s2783_s16, 0 }
 0x270   : > { %p2794_p13 = scmp.ge.s32.totalorder %s2373_s12, 2  ;;  %s1891_s30 = scalar_lea.sflag [#allocation4], %s1890_s29 }
 0x272   : > { %p2203_p3 = pnand %p2794_p13, %p2793_p10 }
 0x274   : > { %2356 = dma.done.wait (!%p2203_p3), %s1891_s30, 16  }
 0x275   : > { %2358 = vsyncadd (!%p2203_p3), %s1891_s30, 4294967280  ;;  %p16_p7 = scmp.ge.s32.totalorder %s2451_s21, 4   ;;  %s2795_s9 = smov %s2365_s10 }
 0x276   : > { %s2796_s10 = smov %s2369_s11  ;;  %s2797_s11 = smov %s2485_s8 }
 0x277   : > { %s2798_s12 = smov %s2451_s21  ;;  %18 = sbr.rel (!%p16_p7) target bundleno = 6 (0x6), region = 77 }
 0x27e   :  { %1895 = vsyncpa [#allocation3], 1 }
 0x27f   :  { %1897 = vsyncpa [#allocation3 + $0x1], 1 }
 0x280   :  { %1898 = vsyncpa [#allocation6], 1 }
 0x281   :  { %1899 = vsyncpa [#allocation4], 1 }
 0x282   :  { %1901 = vsyncpa [#allocation4 + $0x1], 1 }

</bundles_post_ra>
